<compile_context>
chip_gen: v6e
topology: v6e:2x2x1
jax: 0.10.0
libtpu: 0.0.40
codegen_flags: <defaults>
</compile_context>

<pallas_src>
import jax
import jax.numpy as jnp
from jax import lax
from jax.experimental import pallas as pl
from jax.experimental.pallas import tpu as pltpu

LN_EPS = 1e-5  # torch.nn.LayerNorm default


def _round_up(a: int, b: int) -> int:
    return ((a + b - 1) // b) * b


def patch_embed_kernel(x_ref, w_ref, b_ref, g_ref, beta_ref, seg_ref, o_ref):
    # x_ref:    (TMg, G*L)     G original rows packed per kernel row
    # w_ref:    (G*L, 2*G*D)   [kron(I_G, W^T) | kron(I_G, W^T) @ Seg]
    # b_ref:    (1,   2*G*D)   [bias tiled G times | its segment means]
    # g_ref:    (1,   G*D)     LN gamma tiled G times
    # beta_ref: (1,   G*D)     LN beta tiled G times
    # seg_ref:  (G*D, G*D)     block-diagonal segment-mean matrix (entries 1/D)
    # o_ref:    (TMg, G*D)     lane-dense output slab
    gd = o_ref.shape[-1]
    x = x_ref[...]

    # One MXU pass produces both the linear output y and its per-segment mean
    # (mean folded into the weight matrix as W_blk @ Seg).
    yy = jnp.dot(x, w_ref[...], preferred_element_type=jnp.float32) + b_ref[...]
    y = yy[:, :gd]        # 128-lane aligned slices -> no re-layout
    mean = yy[:, gd:]

    centered = y - mean
    # Segmented variance: broadcast-back via one matmul with the segment-mean
    # matrix (MXU, otherwise idle here).
    var = jnp.dot(centered * centered, seg_ref[...],
                  preferred_element_type=jnp.float32)

    # Fold gamma into the rsqrt scale -> single FMA tail (EUP rsqrt is free-ish).
    scale = lax.rsqrt(var + LN_EPS) * g_ref[...]
    o_ref[...] = (centered * scale + beta_ref[...]).astype(o_ref.dtype)


def patch_embedding(x, w, b, gamma, beta, *, tile_rows: int = 512):
    """x: (B, T, L).  w: (D, L) (nn.Linear layout).  Returns (B, T, D)."""
    B, T, L = x.shape
    D = w.shape[0]
    M = B * T

    # Lane-grouping factor: pack G original rows into one 128-lane kernel row
    # so stores are lane-dense.  Falls back to G=1 when D doesn't divide 128.
    if D < 128 and 128 % D == 0:
        G = 128 // D
    else:
        G = 1
    GL, GD = G * L, G * D

    # Grouped-row counts and tiling (pad with zero rows; sliced off below).
    Mg = pl.cdiv(M, G)
    TMg = min(tile_rows, _round_up(Mg, 8))
    Mg_pad = _round_up(Mg, TMg)
    M_pad = Mg_pad * G

    x2d = x.reshape(M, L)
    if M_pad > M:
        x2d = jnp.pad(x2d, ((0, M_pad - M), (0, 0)))
    xg = x2d.reshape(Mg_pad, GL)  # free row-major regroup

    # Block-diagonal weight, segment-mean matrix, and tiled 1-D params.
    f32 = jnp.float32
    eye_g = jnp.eye(G, dtype=f32)
    w_blk = jnp.kron(eye_g, w.T.astype(f32))                       # (GL, GD)
    seg = jnp.kron(eye_g, jnp.full((D, D), 1.0 / D, dtype=f32))    # (GD, GD)
    # Augmented weight/bias: one matmul yields [y | segment_mean(y)].
    w_aug = jnp.concatenate([w_blk, w_blk @ seg], axis=1)          # (GL, 2GD)
    b_blk = jnp.tile(b.astype(f32), G).reshape(1, GD)
    b_aug = jnp.concatenate([b_blk, b_blk @ seg], axis=1)          # (1, 2GD)
    g_blk = jnp.tile(gamma.astype(f32), G).reshape(1, GD)
    beta_blk = jnp.tile(beta.astype(f32), G).reshape(1, GD)

    grid = (Mg_pad // TMg,)
    out_slab = pl.pallas_call(
        patch_embed_kernel,
        out_shape=jax.ShapeDtypeStruct((Mg_pad, GD), x.dtype),
        grid_spec=pltpu.PrefetchScalarGridSpec(
            num_scalar_prefetch=0,
            grid=grid,
            in_specs=[
                pl.BlockSpec((TMg, GL), lambda i: (i, 0)),      # x tiles (pipelined)
                pl.BlockSpec((GL, 2 * GD), lambda i: (0, 0)),   # resident aug weight
                pl.BlockSpec((1, 2 * GD), lambda i: (0, 0)),    # resident aug bias
                pl.BlockSpec((1, GD), lambda i: (0, 0)),        # resident gamma
                pl.BlockSpec((1, GD), lambda i: (0, 0)),        # resident beta
                pl.BlockSpec((GD, GD), lambda i: (0, 0)),       # resident seg matrix
            ],
            out_specs=pl.BlockSpec((TMg, GD), lambda i: (i, 0)),
        ),
        compiler_params=pltpu.CompilerParams(
            dimension_semantics=("parallel",)),  # shard rows across TCs (v7x)
    )(xg, w_aug, b_aug, g_blk, beta_blk, seg)

    # Slab -> (M, D) is a free row-major reinterpretation; drop padded rows.
    out = out_slab.reshape(Mg_pad * G, D)[:M]
    return out.reshape(B, T, D)


def reference(x, w, b, gamma, beta):
    y = jnp.einsum("btl,dl->btd", x, w) + b
    mean = jnp.mean(y, axis=-1, keepdims=True)
    var = jnp.mean((y - mean) ** 2, axis=-1, keepdims=True)
    y_hat = (y - mean) / jnp.sqrt(var + LN_EPS)
    return y_hat * gamma + beta


if __name__ == "__main__":
    # Small shapes consistent with the module: batch=2, seq(t)=8,
    # n_action=4, d_model=32.
    B, T, n_action, d_model = 2, 8, 4, 32

    key = jax.random.PRNGKey(0)
    kx, kw, kb = jax.random.split(key, 3)

    x = jax.random.normal(kx, (B, T, n_action), dtype=jnp.float32)

    # Deterministic parameter init (nn.Linear-style scale).
    bound = 1.0 / jnp.sqrt(jnp.float32(n_action))
    w = jax.random.uniform(kw, (d_model, n_action), jnp.float32, -bound, bound)
    b = jax.random.uniform(kb, (d_model,), jnp.float32, -bound, bound)
    gamma = jnp.ones((d_model,), jnp.float32)   # nn.LayerNorm default
    beta = jnp.zeros((d_model,), jnp.float32)   # nn.LayerNorm default

    fn = jax.jit(patch_embedding)
    out = fn(x, w, b, gamma, beta)
    out = jax.block_until_ready(out)

    ref = reference(x, w, b, gamma, beta)
    assert out.shape == (B, T, d_model)
    assert jnp.allclose(out, ref, atol=1e-5, rtol=1e-5)

    print("KERNEL_OK")
</pallas_src>

<mosaic_0001>
module attributes {stable_mosaic.version = 11 : i64} {
  func.func @patch_embed_kernel(%arg0: i32, %arg1: memref<8x16xf32, #tpu.memory_space<vmem>>, %arg2: memref<16x256xf32, #tpu.memory_space<vmem>>, %arg3: memref<1x256xf32, #tpu.memory_space<vmem>>, %arg4: memref<1x128xf32, #tpu.memory_space<vmem>>, %arg5: memref<1x128xf32, #tpu.memory_space<vmem>>, %arg6: memref<128x128xf32, #tpu.memory_space<vmem>>, %arg7: memref<8x128xf32, #tpu.memory_space<vmem>>) attributes {dimension_semantics = [#tpu.dimension_semantics<parallel>], iteration_bounds = array<i64: 1>, scalar_prefetch = 0 : i64, scratch_operands = 0 : i64, tpu.core_type = #tpu.core_type<tc>, window_params = [{transform_indices = @transform_0, window_bounds = array<i64: 8, 16>}, {pipeline_mode = #tpu.pipeline_mode<synchronous>, transform_indices = @transform_1, window_bounds = array<i64: 16, 256>}, {pipeline_mode = #tpu.pipeline_mode<synchronous>, transform_indices = @transform_2, window_bounds = array<i64: 1, 256>}, {pipeline_mode = #tpu.pipeline_mode<synchronous>, transform_indices = @transform_3, window_bounds = array<i64: 1, 128>}, {pipeline_mode = #tpu.pipeline_mode<synchronous>, transform_indices = @transform_4, window_bounds = array<i64: 1, 128>}, {pipeline_mode = #tpu.pipeline_mode<synchronous>, transform_indices = @transform_5, window_bounds = array<i64: 128, 128>}, {transform_indices = @transform_6, window_bounds = array<i64: 8, 128>}]} {
    %c0 = arith.constant 0 : index
    %c0_0 = arith.constant 0 : index
    %0 = vector.load %arg1[%c0, %c0_0] : memref<8x16xf32, #tpu.memory_space<vmem>>, vector<8x16xf32>
    %c0_1 = arith.constant 0 : index
    %c0_2 = arith.constant 0 : index
    %1 = vector.load %arg2[%c0_1, %c0_2] : memref<16x256xf32, #tpu.memory_space<vmem>>, vector<16x256xf32>
    %cst = arith.constant dense<0.000000e+00> : vector<8x256xf32>
    %2 = tpu.matmul %0, %1, %cst {dimension_numbers = #tpu.dot_dimension_numbers<[1], [0], [0], [1], [0, 0, 1, 1], [], []>} : vector<8x16xf32>, vector<16x256xf32>, vector<8x256xf32> -> vector<8x256xf32>
    %c0_3 = arith.constant 0 : index
    %c0_4 = arith.constant 0 : index
    %3 = vector.load %arg3[%c0_3, %c0_4] : memref<1x256xf32, #tpu.memory_space<vmem>>, vector<1x256xf32>
    %4 = vector.broadcast %3 : vector<1x256xf32> to vector<8x256xf32>
    %5 = arith.addf %2, %4 : vector<8x256xf32>
    %6 = vector.extract_strided_slice %5 {offsets = [0, 0], sizes = [8, 128], strides = [1, 1]} : vector<8x256xf32> to vector<8x128xf32>
    %7 = vector.extract_strided_slice %5 {offsets = [0, 128], sizes = [8, 128], strides = [1, 1]} : vector<8x256xf32> to vector<8x128xf32>
    %8 = arith.subf %6, %7 : vector<8x128xf32>
    %9 = arith.mulf %8, %8 : vector<8x128xf32>
    %c0_5 = arith.constant 0 : index
    %c0_6 = arith.constant 0 : index
    %10 = vector.load %arg6[%c0_5, %c0_6] : memref<128x128xf32, #tpu.memory_space<vmem>>, vector<128x128xf32>
    %cst_7 = arith.constant dense<0.000000e+00> : vector<8x128xf32>
    %11 = tpu.matmul %9, %10, %cst_7 {dimension_numbers = #tpu.dot_dimension_numbers<[1], [0], [0], [1], [0, 0, 1, 1], [], []>} : vector<8x128xf32>, vector<128x128xf32>, vector<8x128xf32> -> vector<8x128xf32>
    %cst_8 = arith.constant 9.99999974E-6 : f32
    %12 = vector.broadcast %cst_8 : f32 to vector<8x128xf32>
    %13 = arith.addf %11, %12 : vector<8x128xf32>
    %14 = math.rsqrt %13 : vector<8x128xf32>
    %c0_9 = arith.constant 0 : index
    %c0_10 = arith.constant 0 : index
    %15 = vector.load %arg4[%c0_9, %c0_10] : memref<1x128xf32, #tpu.memory_space<vmem>>, vector<1x128xf32>
    %16 = vector.broadcast %15 : vector<1x128xf32> to vector<8x128xf32>
    %17 = arith.mulf %14, %16 : vector<8x128xf32>
    %18 = arith.mulf %8, %17 : vector<8x128xf32>
    %c0_11 = arith.constant 0 : index
    %c0_12 = arith.constant 0 : index
    %19 = vector.load %arg5[%c0_11, %c0_12] : memref<1x128xf32, #tpu.memory_space<vmem>>, vector<1x128xf32>
    %20 = vector.broadcast %19 : vector<1x128xf32> to vector<8x128xf32>
    %21 = arith.addf %18, %20 : vector<8x128xf32>
    %c0_13 = arith.constant 0 : index
    %c0_14 = arith.constant 0 : index
    %22 = vector.load %arg7[%c0_13, %c0_14] : memref<8x128xf32, #tpu.memory_space<vmem>>, vector<8x128xf32>
    tpu.vector_store %arg7[%c0_13, %c0_14], %21 {strides = array<i32>} : memref<8x128xf32, #tpu.memory_space<vmem>>, vector<8x128xf32>,
    return
  }
  func.func @transform_0(%arg0: i32) -> (i32, i32) {
    %c0_i32 = arith.constant 0 : i32
    %c0_i32_0 = arith.constant 0 : i32
    return %arg0, %c0_i32 : i32, i32
  }
  func.func @transform_1(%arg0: i32) -> (i32, i32) {
    %c0_i32 = arith.constant 0 : i32
    %c0_i32_0 = arith.constant 0 : i32
    %c0_i32_1 = arith.constant 0 : i32
    return %c0_i32, %c0_i32_0 : i32, i32
  }
  func.func @transform_2(%arg0: i32) -> (i32, i32) {
    %c0_i32 = arith.constant 0 : i32
    %c0_i32_0 = arith.constant 0 : i32
    %c0_i32_1 = arith.constant 0 : i32
    return %c0_i32, %c0_i32_0 : i32, i32
  }
  func.func @transform_3(%arg0: i32) -> (i32, i32) {
    %c0_i32 = arith.constant 0 : i32
    %c0_i32_0 = arith.constant 0 : i32
    %c0_i32_1 = arith.constant 0 : i32
    return %c0_i32, %c0_i32_0 : i32, i32
  }
  func.func @transform_4(%arg0: i32) -> (i32, i32) {
    %c0_i32 = arith.constant 0 : i32
    %c0_i32_0 = arith.constant 0 : i32
    %c0_i32_1 = arith.constant 0 : i32
    return %c0_i32, %c0_i32_0 : i32, i32
  }
  func.func @transform_5(%arg0: i32) -> (i32, i32) {
    %c0_i32 = arith.constant 0 : i32
    %c0_i32_0 = arith.constant 0 : i32
    %c0_i32_1 = arith.constant 0 : i32
    return %c0_i32, %c0_i32_0 : i32, i32
  }
  func.func @transform_6(%arg0: i32) -> (i32, i32) {
    %c0_i32 = arith.constant 0 : i32
    %c0_i32_0 = arith.constant 0 : i32
    return %arg0, %c0_i32 : i32, i32
  }
}

</mosaic_0001>

<bundles_post_ra>
// kernel: tile.18
= control target key start
LH: loop header
LB: loop body
LE: loop exit
PB: predicated region body
PF: predicated region fallthrough
CT: control target
= control target key end

     0   :  { %s22_s0 = inlined_call_operand.vmem [shape: f32[32], index: 0, kind: input, shape index: {}]   ;;  %s23_s1 = inlined_call_operand.vmem [shape: f32[4,32], index: 1, kind: output, shape index: {}]  }
   0x1   :  { %v4_v0 = vld [vmem:[%s22_s0] ss:$0 sm:$0xff] }
   0x2   :  { %5 = vst [vmem:[%s23_s1] sm:$0xf] %v4_v0 }

// kernel: tile.19
= control target key start
LH: loop header
LB: loop body
LE: loop exit
PB: predicated region body
PF: predicated region fallthrough
CT: control target
= control target key end

     0   :  { %vm8_vm0 = vcmask 261120   ;;  %s40_s8 = smov 32   ;;  %s41_s9 = smov 64   ;;  %vm14_vm1 = vcmask 1048320   ;;  %vm20_vm2 = vcmask 785920   ;;  %vm26_vm3 = vcmask 523520   ;;  %s58_s0 = inlined_call_operand.vmem [shape: f32[4,32], index: 0, kind: input, shape index: {}]   ;;  %s59_s1 = inlined_call_operand.vmem [shape: f32[1,128], index: 1, kind: output, shape index: {}]  }
   0x1   :  { %v5_v0 = vld [vmem:[%s58_s0] sm:$0xf]  ;;  %s39_s0 = smov 96  }
   0x2   :  { %6 = vst [vmem:[#allocation1] sm:$0xf] %v5_v0 }
   0x9   :  { %v11_v1 = vld [vmem:[#allocation1 + $0x3] sm:$0x1]   ;;  %v23_v2 = vld [vmem:[#allocation1 + $0x1] sm:$0x1]   ;;  %v7_v3 = vld [vmem:[#allocation1] sm:$0x1]  }
   0xa   :  { %12 = vrot.lane.b32.xlu0 %v11_v1, %s39_s0  ;;  %24 = vrot.lane.b32.xlu1 %v23_v2, %s40_s8  ;;  %v17_v4 = vld [vmem:[#allocation1 + $0x2] sm:$0x1]   ;;  %9 = vst.msk [vmem:[#allocation0] sm:$0x1] %vm8_vm0, %v7_v3  }
   0xe   :  { %18 = vrot.lane.b32.xlu0 %v17_v4, %s41_s9 }
  0x7c   :  { %v13_v5 = vpop.permute.xlu0 %12   ;;  %v25_v6 = vpop.permute.xlu1 %24  }
  0x7d   :  { %15 = vst.msk [vmem:[#allocation0] sm:$0x1] %vm14_vm1, %v13_v5  }
  0x80   :  { %v19_v7 = vpop.permute.xlu0 %18  }
  0x81   :  { %21 = vst.msk [vmem:[#allocation0] sm:$0x1] %vm20_vm2, %v19_v7  }
  0x82   :  { %27 = vst.msk [vmem:[#allocation0] sm:$0x1] %vm26_vm3, %v25_v6  }
  0x89   :  { %v32_v8 = vld [vmem:[#allocation0] sm:$0x1] }
  0x8a   :  { %35 = vst [vmem:[%s59_s1] sm:$0x1] %v32_v8 }

// kernel: patch_embedding.1
= control target key start
LH: loop header
LB: loop body
LE: loop exit
PB: predicated region body
PF: predicated region fallthrough
CT: control target
= control target key end

     0   :  { %v285_v3 = vmov 0.0   ;;  %vm40_vm0 = vcmask 130048   ;;  %vm286_vm1 = vmmov 0   ;;  %v30_v22 = vlaneseq  ;;  %s397_s1 = inlined_call_operand.vmem [shape: f32[16,256], index: 1, kind: input, shape index: {}]   ;;  %s398_s0 = inlined_call_operand.vmem [shape: f32[8,16], index: 0, kind: input, shape index: {}]   ;;  %s399_s5 = inlined_call_operand.vmem [shape: f32[128,128], index: 5, kind: input, shape index: {}]   ;;  %s400_s2 = inlined_call_operand.vmem [shape: f32[1,256], index: 2, kind: input, shape index: {}]   ;;  %s401_s3 = inlined_call_operand.vmem [shape: f32[1,128], index: 3, kind: input, shape index: {}]   ;;  %s402_s4 = inlined_call_operand.vmem [shape: f32[1,128], index: 4, kind: input, shape index: {}]   ;;  %s403_s6 = inlined_call_operand.vmem [shape: f32[8,128], index: 6, kind: output, shape index: {}]  }
   0x1   :  { %v27_v0 = vld [vmem:[%s397_s1 + $0x18] sm:$0xff]  ;;  %v26_v1 = vld [vmem:[%s397_s1 + $0x10] sm:$0xff]  ;;  %v25_v2 = vld [vmem:[%s397_s1 + $0x8] sm:$0xff]  ;;  %108 = vmatprep.mubr.f32.mxu0 %v285_v3  ;;  %246 = vmatprep.subr.mxu1 %v285_v3 }
   0x2   :  { %72 = vmatprep.subr.mxu0 %v27_v0  ;;  %v24_v4 = vld [vmem:[%s397_s1] sm:$0xff]  ;;  %v132_v5 = vld [vmem:[%s399_s5 + $0x78] sm:$0xff]  ;;  %v131_v7 = vld [vmem:[%s399_s5 + $0x70] sm:$0xff]  ;;  %278 = vmatprep.mubr.msk.f32.mxu1 %vm286_vm1, %v285_v3  ;;  %v31_v23 = vshrl.u32 %v30_v22, 7 }
   0x3   :  { %73 = vmatpush1.msra.mxu0 %v26_v1  ;;  %v23_v6 = vld [vmem:[%s398_s0] sm:$0xff]  ;;  %247 = vmatpush3.msra.mxu1 %v132_v5  ;;  %v130_v8 = vld [vmem:[%s399_s5 + $0x68] sm:$0xff]  ;;  %v128_v10 = vld [vmem:[%s399_s5 + $0x58] sm:$0xff] }
   0x4   :  { %74 = vmatprep.subr.mxu0 %v25_v2  ;;  %248 = vmatprep.subr.mxu1 %v285_v3  ;;  %v129_v9 = vld [vmem:[%s399_s5 + $0x60] sm:$0xff]  ;;  %v127_v11 = vld [vmem:[%s399_s5 + $0x50] sm:$0xff]  ;;  %v126_v12 = vld [vmem:[%s399_s5 + $0x48] sm:$0xff]  ;;  %v32_v24 = vsub.s32 0, %v31_v23  ;;  %v36_v25 = vsub.s32 1, %v31_v23 }
   0x5   :  { %75 = vmatpush1.msra.mxu0 %v24_v4  ;;  %249 = vmatpush3.msra.mxu1 %v131_v7  ;;  %v125_v13 = vld [vmem:[%s399_s5 + $0x40] sm:$0xff]  ;;  %v124_v14 = vld [vmem:[%s399_s5 + $0x38] sm:$0xff]  ;;  %v123_v15 = vld [vmem:[%s399_s5 + $0x30] sm:$0xff] }
   0x6   :  { %226 = vmatmul.mubr.msk.f32.vlgmr.msra.gmra.mxu0 %vm40_vm0, %v23_v6  ;;  %250 = vmatprep.subr.mxu1 %v285_v3  ;;  %v122_v16 = vld [vmem:[%s399_s5 + $0x28] sm:$0xff]  ;;  %v121_v17 = vld [vmem:[%s399_s5 + $0x20] sm:$0xff]  ;;  %v120_v18 = vld [vmem:[%s399_s5 + $0x18] sm:$0xff] }
   0x7   :  { %251 = vmatpush3.msra.mxu1 %v130_v8  ;;  %v119_v19 = vld [vmem:[%s399_s5 + $0x10] sm:$0xff]  ;;  %v118_v20 = vld [vmem:[%s399_s5 + $0x8] sm:$0xff]  ;;  %v117_v21 = vld [vmem:[%s399_s5] sm:$0xff] }
   0x8   :  { %252 = vmatprep.subr.mxu1 %v285_v3  ;;  %v28_v26 = vld [vmem:[%s400_s2] sm:$0x3] }
   0x9   :  { %253 = vmatpush3.msra.mxu1 %v129_v9  ;;  %v33_v27 = vrot.slane %v28_v26, %v32_v24  ;;  %v37_v28 = vrot.slane %v28_v26, %v36_v25  ;;  %v227_v38 = vld [vmem:[%s401_s3] ss:$0 sm:$0xff] }
   0xa   :  { %254 = vmatprep.subr.mxu1 %v285_v3  ;;  %v228_v41 = vld [vmem:[%s402_s4] ss:$0 sm:$0xff] }
   0xb   :  { %255 = vmatpush3.msra.mxu1 %v128_v10 }
   0xc   :  { %256 = vmatprep.subr.mxu1 %v285_v3 }
   0xd   :  { %257 = vmatpush3.msra.mxu1 %v127_v11 }
   0xe   :  { %258 = vmatprep.subr.mxu1 %v285_v3 }
   0xf   :  { %259 = vmatpush3.msra.mxu1 %v126_v12 }
  0x10   :  { %260 = vmatprep.subr.mxu1 %v285_v3 }
  0x11   :  { %261 = vmatpush3.msra.mxu1 %v125_v13 }
  0x12   :  { %262 = vmatprep.subr.mxu1 %v285_v3 }
  0x13   :  { %263 = vmatpush3.msra.mxu1 %v124_v14 }
  0x14   :  { %264 = vmatprep.subr.mxu1 %v285_v3 }
  0x15   :  { %265 = vmatpush3.msra.mxu1 %v123_v15 }
  0x16   :  { %266 = vmatprep.subr.mxu1 %v285_v3 }
  0x17   :  { %267 = vmatpush3.msra.mxu1 %v122_v16 }
  0x18   :  { %268 = vmatprep.subr.mxu1 %v285_v3 }
  0x19   :  { %269 = vmatpush3.msra.mxu1 %v121_v17 }
  0x1a   :  { %270 = vmatprep.subr.mxu1 %v285_v3 }
  0x1b   :  { %271 = vmatpush3.msra.mxu1 %v120_v18 }
  0x1c   :  { %272 = vmatprep.subr.mxu1 %v285_v3 }
  0x1d   :  { %273 = vmatpush3.msra.mxu1 %v119_v19 }
  0x1e   :  { %274 = vmatprep.subr.mxu1 %v285_v3 }
  0x1f   :  { %275 = vmatpush3.msra.mxu1 %v118_v20 }
  0x20   :  { %276 = vmatprep.subr.mxu1 %v285_v3 }
  0x21   :  { %277 = vmatpush3.msra.mxu1 %v117_v21 }
  0xc6   :  { %v110_v29 = vpop.f32.mrf.mxu0 }
  0xc7   :  { %v111_v31 = vadd.f32 %v110_v29, %v33_v27 }
  0xc8   :  { %v112_v30 = vpop.f32.mrf.mxu0 }
  0xc9   :  { %v113_v32 = vadd.f32 %v112_v30, %v37_v28 }
  0xcb   :  { %v115_v33 = vsub.f32 %v111_v31, %v113_v32 }
  0xcd   :  { %v116_v34 = vmul.f32 %v115_v33, %v115_v33 }
  0xcf   :  { %279 = vmatmul.mubr.f32.vlgmr.msra.gmra.mxu1 %v116_v34 }
 0x18f   :  { %v199_v35 = vpop.f32.mrf.mxu1 }
 0x190   :  { %v200_v36 = vadd.f32 1e-05, %v199_v35 }
 0x191   :  { %v280_v37 = vpop.f32.mrf.mxu1 }
 0x192   :  { %283 = vrsqrt.f32 %v200_v36 }
 0x19f   :  { %v284_v39 = vpop.eup %283 }
 0x1a0   :  { %v211_v40 = vmul.f32 %v284_v39, %v227_v38 }
 0x1a2   :  { %v212_v42 = vmul.f32 %v211_v40, %v115_v33 }
 0x1a4   :  { %v220_v43 = vadd.f32 %v228_v41, %v212_v42 }
 0x1a6   :  { %221 = vst [vmem:[%s403_s6] sm:$0xff] %v220_v43 }

</bundles_post_ra>
